<compile_context>
chip_gen: v7x
topology: tpu7x:2x2x1
jax: 0.10.0
libtpu: 0.0.40
codegen_flags: <defaults>
</compile_context>

<pallas_src>
import functools

import jax
import jax.numpy as jnp
from jax.experimental import pallas as pl
from jax.experimental.pallas import tpu as pltpu

LANES = 128
_NUM_SUMS = 7  # sum(x), sum(x^2), sum(y), sum(y^2), sum(d^2), sum(|d|), sum((x^3-y^3)^2)


def _partial_sums_kernel(x_ref, y_ref, out_ref, *, tm, sub, unroll):
    """Fused elementwise + reduction over one (tm, 128) block.

    Accumulators are (sub, 128) f32 values carried through a fori_loop, so at
    any point only ~15 vregs are live (7 accumulators + a handful of temps);
    nothing spills through VMEM. The result slab is written exactly once.
    """
    n_chunks = tm // sub

    def body(c, accs):
        sx, sxx, sy, syy, sdd, sad, sd3 = accs
        off = pl.multiple_of(c * sub, sub)
        x = x_ref[pl.ds(off, sub), :].astype(jnp.float32)
        y = y_ref[pl.ds(off, sub), :].astype(jnp.float32)
        xx = x * x
        yy = y * y
        d = x - y
        d3 = xx * x - yy * y
        # TODO(synk): (x^3 - y^3)^2 ~ x^6 can overflow f32 for |x| >~ 50; this
        # matches PyTorch f32 semantics, so no rescaling is applied here.
        return (sx + x, sxx + xx, sy + y, syy + yy,
                sdd + d * d, sad + jnp.abs(d), sd3 + d3 * d3)

    zero = jnp.zeros((sub, LANES), jnp.float32)
    accs = jax.lax.fori_loop(0, n_chunks, body, (zero,) * _NUM_SUMS,
                             unroll=unroll)

    for k in range(_NUM_SUMS):
        out_ref[0, k] = accs[k]


def _elem_sums(x, y):
    """Plain-JAX seven sums (used for the tail remainder and the small-n path)."""
    x = x.astype(jnp.float32)
    y = y.astype(jnp.float32)
    xx = x * x
    yy = y * y
    d = x - y
    d3 = xx * x - yy * y
    return jnp.stack([x.sum(), xx.sum(), y.sum(), yy.sum(),
                      (d * d).sum(), jnp.abs(d).sum(), (d3 * d3).sum()])


def _finalize(sums, n):
    """Scalar epilogue: means / unbiased stds / loss formula."""
    nf = jnp.float32(n)
    sx, sxx, sy, syy, sdd, sad, sd3 = (sums[i] for i in range(_NUM_SUMS))

    mean_x = sx / nf
    mean_y = sy / nf
    # torch.std default: unbiased (ddof = 1).
    # TODO(synk): sxx - sx^2/n in f32 cancels when |mean| >> std; the clamp keeps
    # it finite (a shifted accumulation would be needed for such inputs).
    var_x = jnp.maximum(sxx - sx * sx / nf, 0.0) / (nf - 1.0)
    var_y = jnp.maximum(syy - sy * sy / nf, 0.0) / (nf - 1.0)
    mstd = (jnp.sqrt(var_x) - jnp.sqrt(var_y)) ** 2 + (mean_x - mean_y) ** 2

    mse = sdd / nf
    mae = sad / nf
    msea = mse + mae
    l3 = jnp.sqrt(jnp.sqrt(sd3 / nf))            # (...) ** 0.25
    return l3 * msea ** 4 + mstd


def l3_mstd_mse_old(x, y, *, tm=2048, min_kernel_elems=65536):
    assert x.shape == y.shape, "x and y must have the same shape"
    n = int(x.size)
    assert n >= 2, "need at least 2 elements for an unbiased std"

    xf = jnp.ravel(x)
    yf = jnp.ravel(y)

    itemsize = jnp.dtype(x.dtype).itemsize
    sub = {4: 8, 2: 16, 1: 32}.get(itemsize, 8)   # sublane granularity per dtype

    rows = n // LANES                              # full 128-lane rows
    tm_eff = max(sub, (int(tm) // sub) * sub)
    tm_eff = min(tm_eff, (rows // sub) * sub) if rows >= sub else 0
    rb = rows // tm_eff if tm_eff else 0           # number of full row blocks

    if rb == 0 or n < min_kernel_elems:
        # Small-n fast path: launch/pipeline overhead dominates; plain JAX wins.
        return _finalize(_elem_sums(xf, yf), n)

    cover_rows = rb * tm_eff
    cover = cover_rows * LANES
    # Full-extent slice (cover == n) is elided by XLA, i.e. the common 128- and
    # tm-aligned case streams the inputs with zero extra HBM passes.
    # TODO(synk): for n % 128 != 0 the 128-aligned-prefix slice still costs one
    # bounded copy; a fully copy-free path would need manual 1-D DMA.
    x_main = jax.lax.slice(xf, (0,), (cover,)).reshape(cover_rows, LANES)
    y_main = jax.lax.slice(yf, (0,), (cover,)).reshape(cover_rows, LANES)

    unroll = max(1, min(8, tm_eff // sub))
    kernel = functools.partial(_partial_sums_kernel,
                               tm=tm_eff, sub=sub, unroll=unroll)

    partials = pl.pallas_call(
        kernel,
        out_shape=jax.ShapeDtypeStruct((rb, _NUM_SUMS, sub, LANES), jnp.float32),
        grid_spec=pltpu.PrefetchScalarGridSpec(
            num_scalar_prefetch=0,
            grid=(rb,),
            in_specs=[
                pl.BlockSpec((tm_eff, LANES), lambda i: (i, 0)),
                pl.BlockSpec((tm_eff, LANES), lambda i: (i, 0)),
            ],
            out_specs=pl.BlockSpec((1, _NUM_SUMS, sub, LANES),
                                   lambda i: (i, 0, 0, 0)),
        ),
        compiler_params=pltpu.CompilerParams(
            dimension_semantics=("parallel",)),
        cost_estimate=pl.CostEstimate(
            flops=20 * cover,
            transcendentals=0,
            bytes_accessed=2 * cover * itemsize
                           + rb * _NUM_SUMS * sub * LANES * 4),
    )(x_main, y_main)

    sums = jnp.sum(partials, axis=(0, 2, 3))       # (7,)
    if cover < n:
        # Ragged remainder (< tm*128 + 127 elements): fold into the epilogue.
        sums = sums + _elem_sums(jax.lax.slice(xf, (cover,), (n,)),
                                 jax.lax.slice(yf, (cover,), (n,)))
    return _finalize(sums, n)


def _reference(x, y):
    x = x.astype(jnp.float32)
    y = y.astype(jnp.float32)
    std = (jnp.std(x, ddof=1) - jnp.std(y, ddof=1)) ** 2
    mean = (jnp.mean(x) - jnp.mean(y)) ** 2
    mstd = std + mean
    mse = jnp.mean((x - y) ** 2)
    mae = jnp.mean(jnp.abs(x - y))
    msea = mse + mae
    l3 = jnp.mean((x ** 3 - y ** 3) ** 2) ** 0.25
    return l3 * msea ** 4 + mstd


if __name__ == "__main__":
    key = jax.random.PRNGKey(0)
    kx, ky, kx2, ky2 = jax.random.split(key, 4)

    # NCHW-shaped inputs consistent with a typical conv-loss use case.
    x = jax.random.normal(kx, (2, 4, 16, 16), dtype=jnp.float32)
    y = jax.random.normal(ky, (2, 4, 16, 16), dtype=jnp.float32)

    # Force the Pallas path (bypass the small-n fast path) so the kernel runs.
    out = l3_mstd_mse_old(x, y, min_kernel_elems=0)
    jax.block_until_ready(out)
    ref = _reference(x, y)
    assert jnp.allclose(out, ref, rtol=1e-4, atol=1e-5), (out, ref)

    # Ragged shape: exercises the 128-misaligned / partial-row-block tail path.
    x2 = jax.random.normal(kx2, (3, 5, 17, 13), dtype=jnp.float32)
    y2 = jax.random.normal(ky2, (3, 5, 17, 13), dtype=jnp.float32)
    out2 = l3_mstd_mse_old(x2, y2, min_kernel_elems=0)
    jax.block_until_ready(out2)
    ref2 = _reference(x2, y2)
    assert jnp.allclose(out2, ref2, rtol=1e-4, atol=1e-5), (out2, ref2)

    print("KERNEL_OK")
</pallas_src>

<mosaic_0001>
module attributes {stable_mosaic.version = 11 : i64} {
  func.func @_partial_sums_kernel(%arg0: i32, %arg1: memref<16x128xf32, #tpu.memory_space<vmem>>, %arg2: memref<16x128xf32, #tpu.memory_space<vmem>>, %arg3: memref<1x7x8x128xf32, #tpu.memory_space<vmem>>) attributes {dimension_semantics = [#tpu.dimension_semantics<parallel>], iteration_bounds = array<i64: 1>, scalar_prefetch = 0 : i64, scratch_operands = 0 : i64, tpu.core_type = #tpu.core_type<tc>, window_params = [{transform_indices = @transform_0, window_bounds = array<i64: 16, 128>}, {transform_indices = @transform_1, window_bounds = array<i64: 16, 128>}, {transform_indices = @transform_2, window_bounds = array<i64: 1, 7, 8, 128>}]} {
    %cst = arith.constant 0.000000e+00 : f32
    %0 = vector.broadcast %cst : f32 to vector<8x128xf32>
    %c0_i32 = arith.constant 0 : i32
    %c8_i32 = arith.constant 8 : i32
    %1 = arith.muli %c0_i32, %c8_i32 : i32
    %2 = tpu.assume_multiple %1, 8 : i32
    %3 = arith.index_cast %2 : i32 to index
    %c0 = arith.constant 0 : index
    %4 = vector.load %arg1[%3, %c0] : memref<16x128xf32, #tpu.memory_space<vmem>>, vector<8x128xf32>
    %5 = arith.index_cast %2 : i32 to index
    %c0_0 = arith.constant 0 : index
    %6 = vector.load %arg2[%5, %c0_0] : memref<16x128xf32, #tpu.memory_space<vmem>>, vector<8x128xf32>
    %7 = arith.mulf %4, %4 : vector<8x128xf32>
    %8 = arith.mulf %6, %6 : vector<8x128xf32>
    %9 = arith.subf %4, %6 : vector<8x128xf32>
    %10 = arith.mulf %7, %4 : vector<8x128xf32>
    %11 = arith.mulf %8, %6 : vector<8x128xf32>
    %12 = arith.subf %10, %11 : vector<8x128xf32>
    %13 = arith.addf %0, %4 : vector<8x128xf32>
    %14 = arith.addf %0, %7 : vector<8x128xf32>
    %15 = arith.addf %0, %6 : vector<8x128xf32>
    %16 = arith.addf %0, %8 : vector<8x128xf32>
    %17 = arith.mulf %9, %9 : vector<8x128xf32>
    %18 = arith.addf %0, %17 : vector<8x128xf32>
    %19 = math.absf %9 : vector<8x128xf32>
    %20 = arith.addf %0, %19 : vector<8x128xf32>
    %21 = arith.mulf %12, %12 : vector<8x128xf32>
    %22 = arith.addf %0, %21 : vector<8x128xf32>
    %c1_i32 = arith.constant 1 : i32
    %c8_i32_1 = arith.constant 8 : i32
    %23 = arith.muli %c1_i32, %c8_i32_1 : i32
    %24 = tpu.assume_multiple %23, 8 : i32
    %25 = arith.index_cast %24 : i32 to index
    %c0_2 = arith.constant 0 : index
    %26 = vector.load %arg1[%25, %c0_2] : memref<16x128xf32, #tpu.memory_space<vmem>>, vector<8x128xf32>
    %27 = arith.index_cast %24 : i32 to index
    %c0_3 = arith.constant 0 : index
    %28 = vector.load %arg2[%27, %c0_3] : memref<16x128xf32, #tpu.memory_space<vmem>>, vector<8x128xf32>
    %29 = arith.mulf %26, %26 : vector<8x128xf32>
    %30 = arith.mulf %28, %28 : vector<8x128xf32>
    %31 = arith.subf %26, %28 : vector<8x128xf32>
    %32 = arith.mulf %29, %26 : vector<8x128xf32>
    %33 = arith.mulf %30, %28 : vector<8x128xf32>
    %34 = arith.subf %32, %33 : vector<8x128xf32>
    %35 = arith.addf %13, %26 : vector<8x128xf32>
    %36 = arith.addf %14, %29 : vector<8x128xf32>
    %37 = arith.addf %15, %28 : vector<8x128xf32>
    %38 = arith.addf %16, %30 : vector<8x128xf32>
    %39 = arith.mulf %31, %31 : vector<8x128xf32>
    %40 = arith.addf %18, %39 : vector<8x128xf32>
    %41 = math.absf %31 : vector<8x128xf32>
    %42 = arith.addf %20, %41 : vector<8x128xf32>
    %43 = arith.mulf %34, %34 : vector<8x128xf32>
    %44 = arith.addf %22, %43 : vector<8x128xf32>
    %c2_i32 = arith.constant 2 : i32
    %c0_4 = arith.constant 0 : index
    %c0_5 = arith.constant 0 : index
    %c0_6 = arith.constant 0 : index
    %c0_7 = arith.constant 0 : index
    %45 = vector.load %arg3[%c0_4, %c0_5, %c0_6, %c0_7] : memref<1x7x8x128xf32, #tpu.memory_space<vmem>>, vector<1x1x8x128xf32>
    %46 = vector.shape_cast %45 : vector<1x1x8x128xf32> to vector<8x128xf32>
    %47 = vector.shape_cast %35 : vector<8x128xf32> to vector<1x1x8x128xf32>
    tpu.vector_store %arg3[%c0_4, %c0_5, %c0_6, %c0_7], %47 {strides = array<i32>} : memref<1x7x8x128xf32, #tpu.memory_space<vmem>>, vector<1x1x8x128xf32>,
    %c0_8 = arith.constant 0 : index
    %c1 = arith.constant 1 : index
    %c0_9 = arith.constant 0 : index
    %c0_10 = arith.constant 0 : index
    %48 = vector.load %arg3[%c0_8, %c1, %c0_9, %c0_10] : memref<1x7x8x128xf32, #tpu.memory_space<vmem>>, vector<1x1x8x128xf32>
    %49 = vector.shape_cast %48 : vector<1x1x8x128xf32> to vector<8x128xf32>
    %50 = vector.shape_cast %36 : vector<8x128xf32> to vector<1x1x8x128xf32>
    tpu.vector_store %arg3[%c0_8, %c1, %c0_9, %c0_10], %50 {strides = array<i32>} : memref<1x7x8x128xf32, #tpu.memory_space<vmem>>, vector<1x1x8x128xf32>,
    %c0_11 = arith.constant 0 : index
    %c2 = arith.constant 2 : index
    %c0_12 = arith.constant 0 : index
    %c0_13 = arith.constant 0 : index
    %51 = vector.load %arg3[%c0_11, %c2, %c0_12, %c0_13] : memref<1x7x8x128xf32, #tpu.memory_space<vmem>>, vector<1x1x8x128xf32>
    %52 = vector.shape_cast %51 : vector<1x1x8x128xf32> to vector<8x128xf32>
    %53 = vector.shape_cast %37 : vector<8x128xf32> to vector<1x1x8x128xf32>
    tpu.vector_store %arg3[%c0_11, %c2, %c0_12, %c0_13], %53 {strides = array<i32>} : memref<1x7x8x128xf32, #tpu.memory_space<vmem>>, vector<1x1x8x128xf32>,
    %c0_14 = arith.constant 0 : index
    %c3 = arith.constant 3 : index
    %c0_15 = arith.constant 0 : index
    %c0_16 = arith.constant 0 : index
    %54 = vector.load %arg3[%c0_14, %c3, %c0_15, %c0_16] : memref<1x7x8x128xf32, #tpu.memory_space<vmem>>, vector<1x1x8x128xf32>
    %55 = vector.shape_cast %54 : vector<1x1x8x128xf32> to vector<8x128xf32>
    %56 = vector.shape_cast %38 : vector<8x128xf32> to vector<1x1x8x128xf32>
    tpu.vector_store %arg3[%c0_14, %c3, %c0_15, %c0_16], %56 {strides = array<i32>} : memref<1x7x8x128xf32, #tpu.memory_space<vmem>>, vector<1x1x8x128xf32>,
    %c0_17 = arith.constant 0 : index
    %c4 = arith.constant 4 : index
    %c0_18 = arith.constant 0 : index
    %c0_19 = arith.constant 0 : index
    %57 = vector.load %arg3[%c0_17, %c4, %c0_18, %c0_19] : memref<1x7x8x128xf32, #tpu.memory_space<vmem>>, vector<1x1x8x128xf32>
    %58 = vector.shape_cast %57 : vector<1x1x8x128xf32> to vector<8x128xf32>
    %59 = vector.shape_cast %40 : vector<8x128xf32> to vector<1x1x8x128xf32>
    tpu.vector_store %arg3[%c0_17, %c4, %c0_18, %c0_19], %59 {strides = array<i32>} : memref<1x7x8x128xf32, #tpu.memory_space<vmem>>, vector<1x1x8x128xf32>,
    %c0_20 = arith.constant 0 : index
    %c5 = arith.constant 5 : index
    %c0_21 = arith.constant 0 : index
    %c0_22 = arith.constant 0 : index
    %60 = vector.load %arg3[%c0_20, %c5, %c0_21, %c0_22] : memref<1x7x8x128xf32, #tpu.memory_space<vmem>>, vector<1x1x8x128xf32>
    %61 = vector.shape_cast %60 : vector<1x1x8x128xf32> to vector<8x128xf32>
    %62 = vector.shape_cast %42 : vector<8x128xf32> to vector<1x1x8x128xf32>
    tpu.vector_store %arg3[%c0_20, %c5, %c0_21, %c0_22], %62 {strides = array<i32>} : memref<1x7x8x128xf32, #tpu.memory_space<vmem>>, vector<1x1x8x128xf32>,
    %c0_23 = arith.constant 0 : index
    %c6 = arith.constant 6 : index
    %c0_24 = arith.constant 0 : index
    %c0_25 = arith.constant 0 : index
    %63 = vector.load %arg3[%c0_23, %c6, %c0_24, %c0_25] : memref<1x7x8x128xf32, #tpu.memory_space<vmem>>, vector<1x1x8x128xf32>
    %64 = vector.shape_cast %63 : vector<1x1x8x128xf32> to vector<8x128xf32>
    %65 = vector.shape_cast %44 : vector<8x128xf32> to vector<1x1x8x128xf32>
    tpu.vector_store %arg3[%c0_23, %c6, %c0_24, %c0_25], %65 {strides = array<i32>} : memref<1x7x8x128xf32, #tpu.memory_space<vmem>>, vector<1x1x8x128xf32>,
    return
  }
  func.func @transform_0(%arg0: i32) -> (i32, i32) {
    %c0_i32 = arith.constant 0 : i32
    %c0_i32_0 = arith.constant 0 : i32
    return %arg0, %c0_i32 : i32, i32
  }
  func.func @transform_1(%arg0: i32) -> (i32, i32) {
    %c0_i32 = arith.constant 0 : i32
    %c0_i32_0 = arith.constant 0 : i32
    return %arg0, %c0_i32 : i32, i32
  }
  func.func @transform_2(%arg0: i32) -> (i32, i32, i32, i32) {
    %c0_i32 = arith.constant 0 : i32
    %c0_i32_0 = arith.constant 0 : i32
    %c0_i32_1 = arith.constant 0 : i32
    %c0_i32_2 = arith.constant 0 : i32
    return %arg0, %c0_i32, %c0_i32_0, %c0_i32_1 : i32, i32, i32, i32
  }
}

</mosaic_0001>

<bundles_post_ra>
// kernel: tpu_custom_call.1
= control target key start
LH: loop header
LB: loop body
LE: loop exit
PB: predicated region body
PF: predicated region fallthrough
CT: control target
= control target key end

     0   :  { %7 = vsyncpa [#allocation3], 0  ;;  %s251_s0 = inlined_call_operand.hbm [shape: f32[16,128], index: 0, kind: input, shape index: {}]   ;;  %s252_s1 = inlined_call_operand.hbm [shape: f32[16,128], index: 1, kind: input, shape index: {}]   ;;  %s253_s2 = inlined_call_operand.hbm [shape: f32[1,7,8,128], index: 2, kind: output, shape index: {}]  }
   0x1   :  { %8 = vsyncpa [#allocation6], 0 }
   0x2   :  { %9 = vsyncpa [#allocation4], 0  ;;  %s186_s9 = smov [#allocation2]   ;;  %s114_s13 = scalar_lea.hbm %s251_s0, 256 }
   0x3   :  { %s15_s10 = sshll.u32 %s186_s9, 4  ;;  %p115_p0 = scmp.ne.s32.totalorder %s251_s0, %s114_s13  ;;  %s16_s10 = int_to_ptr.vmem [resolvable:$true] %s15_s10 }
   0x4   :  { %p118_p1 = scmp.lt.u32.totalorder %s114_s13, %s251_s0 }
   0x6   :  { %p120_p2 = pnand %p118_p1, %p115_p0 }
   0x8   :  { %123 = shalt.err (!%p120_p2)
}
   0x9   :  { %s124_s18 = scalar_lea.vmem %s16_s10, 256  ;;  %p129_p4 = scmp.lt.s32.totalorder %s16_s10, %s16_s10 }
   0xa   :  { %p125_p3 = scmp.ne.s32.totalorder %s16_s10, %s124_s18  ;;  %p130_p5 = scmp.lt.s32.totalorder %s124_s18, %s124_s18 }
   0xc   :  { %p131_p6 = por %p130_p5, %p129_p4 }
   0xe   :  { %p132_p7 = pnand %p131_p6, %p125_p3 }
  0x10   :  { %135 = shalt.err (!%p132_p7)
}
  0x11   :  { %s187_s19 = smov 128   ;;  %s188_s20 = smov 8  }
  0x12   :  { %21 = dma.hbm_to_vmem [thread:$0]  %s251_s0, 256, %s16_s10, [#allocation3], %s187_s19, %s187_s19, %s188_s20  }
  0x13   :  { %s189_s23 = smov [#allocation5]   ;;  %s136_s27 = scalar_lea.hbm %s252_s1, 256 }
  0x14   :  { %s27_s24 = sshll.u32 %s189_s23, 4  ;;  %p137_p8 = scmp.ne.s32.totalorder %s252_s1, %s136_s27  ;;  %s28_s24 = int_to_ptr.vmem [resolvable:$true] %s27_s24 }
  0x15   :  { %p140_p9 = scmp.lt.u32.totalorder %s136_s27, %s252_s1 }
  0x17   :  { %p142_p10 = pnand %p140_p9, %p137_p8 }
  0x19   :  { %145 = shalt.err (!%p142_p10)
}
  0x1a   :  { %s146_s4 = scalar_lea.vmem %s28_s24, 256  ;;  %p151_p12 = scmp.lt.s32.totalorder %s28_s24, %s28_s24 }
  0x1b   :  { %p147_p11 = scmp.ne.s32.totalorder %s28_s24, %s146_s4  ;;  %p152_p13 = scmp.lt.s32.totalorder %s146_s4, %s146_s4 }
  0x1d   :  { %p153_p0 = por %p152_p13, %p151_p12 }
  0x1f   :  { %p154_p1 = pnand %p153_p0, %p147_p11 }
  0x21   :  { %157 = shalt.err (!%p154_p1)
}
  0x22   :  { %33 = dma.hbm_to_vmem [thread:$0]  %s252_s1, 256, %s28_s24, [#allocation6], %s187_s19, %s187_s19, %s188_s20  }
  0x23   :  { %180 = dma.done.wait [#allocation3], 256  }
  0x24   :  { %181 = vsyncadd [#allocation3], 4294967040 }
  0x25   :  { %182 = dma.done.wait [#allocation6], 256  }
  0x26   :  { %183 = vsyncadd [#allocation6], 4294967040  ;;  %v40_v0 = vld [vmem:[#allocation2] sm:$0xff]  ;;  %v59_v1 = vld [vmem:[#allocation2 + $0x8] sm:$0xff]  ;;  %s190_s1 = smov [#allocation7]  }
  0x27   :  { %v41_v2 = vld [vmem:[#allocation5] sm:$0xff]  ;;  %v68_v3 = vadd.f32 %v59_v1, %v40_v0  ;;  %v42_v4 = vmul.f32 %v40_v0, %v40_v0  ;;  %v62_v5 = vmul.f32 %v59_v1, %v59_v1  ;;  %v61_v6 = vld [vmem:[#allocation5 + $0x8] sm:$0xff]  ;;  %s96_s6 = sshll.u32 %s190_s1, 4  ;;  %s97_s6 = int_to_ptr.vmem [resolvable:$true] %s96_s6 }
  0x28   :  { %v43_v7 = vmul.f32 %v41_v2, %v41_v2  ;;  %v70_v8 = vadd.f32 %v61_v6, %v41_v2  ;;  %v63_v9 = vmul.f32 %v61_v6, %v61_v6  ;;  %v44_v10 = vsub.f32 %v40_v0, %v41_v2  ;;  %s158_s7 = scalar_lea.vmem %s97_s6, 896  ;;  %p163_p3 = scmp.lt.s32.totalorder %s97_s6, %s97_s6 }
  0x29   :  { %v64_v11 = vsub.f32 %v59_v1, %v61_v6  ;;  %78 = vst [vmem:[#allocation7] sm:$0xff] %v68_v3  ;;  %v45_v12 = vmul.f32 %v42_v4, %v40_v0  ;;  %v65_v13 = vmul.f32 %v62_v5, %v59_v1  ;;  %v69_v14 = vadd.f32 %v62_v5, %v42_v4  ;;  %p159_p2 = scmp.ne.s32.totalorder %s97_s6, %s158_s7  ;;  %p164_p4 = scmp.lt.s32.totalorder %s158_s7, %s158_s7 }
  0x2a   :  { %v46_v15 = vmul.f32 %v43_v7, %v41_v2  ;;  %82 = vst [vmem:[#allocation7 + $0x10] sm:$0xff] %v70_v8  ;;  %v66_v16 = vmul.f32 %v63_v9, %v61_v6  ;;  %v71_v17 = vadd.f32 %v63_v9, %v43_v7  ;;  %v52_v18 = vmul.f32 %v44_v10, %v44_v10 }
  0x2b   :  { %v72_v19 = vmul.f32 %v64_v11, %v64_v11  ;;  %80 = vst [vmem:[#allocation7 + $0x8] sm:$0xff] %v69_v14  ;;  %v54_v20 = vand.u32 2147483647, %v44_v10  ;;  %v74_v21 = vand.u32 2147483647, %v64_v11  ;;  %p165_p5 = por %p164_p4, %p163_p3 }
  0x2c   :  { %v47_v22 = vsub.f32 %v45_v12, %v46_v15  ;;  %84 = vst [vmem:[#allocation7 + $0x18] sm:$0xff] %v71_v17  ;;  %v67_v24 = vsub.f32 %v65_v13, %v66_v16 }
  0x2d   :  { %v73_v23 = vadd.f32 %v72_v19, %v52_v18  ;;  %v75_v25 = vadd.f32 %v74_v21, %v54_v20  ;;  %p166_p6 = pnand %p165_p5, %p159_p2 }
  0x2e   :  { %v56_v26 = vmul.f32 %v47_v22, %v47_v22  ;;  %v76_v27 = vmul.f32 %v67_v24, %v67_v24 }
  0x2f   :  { %86 = vst [vmem:[#allocation7 + $0x20] sm:$0xff] %v73_v23  ;;  %88 = vst [vmem:[#allocation7 + $0x28] sm:$0xff] %v75_v25 }
  0x30   :  { %v77_v28 = vadd.f32 %v76_v27, %v56_v26 }
  0x32   :  { %90 = vst [vmem:[#allocation7 + $0x30] sm:$0xff] %v77_v28 }
  0x33   :  { %169 = shalt.err (!%p166_p6)
}
  0x34   :  { %s170_s10 = scalar_lea.hbm %s253_s2, 896 }
  0x35   :  { %p171_p7 = scmp.ne.s32.totalorder %s253_s2, %s170_s10  ;;  %p174_p8 = scmp.lt.u32.totalorder %s170_s10, %s253_s2 }
  0x37   :  { %p176_p9 = pnand %p174_p8, %p171_p7 }
  0x39   :  { %179 = shalt.err (!%p176_p9)
}
  0x3a   :  { %102 = dma.vmem_to_hbm [thread:$0]  %s97_s6, 896, %s253_s2, [#allocation4], %s187_s19, %s187_s19, %s188_s20  }
  0x3b   :  { %184 = dma.done.wait [#allocation4], 896  }
  0x3c   :  { %185 = vsyncadd [#allocation4], 4294966400 }
  0x3d   :  { %106 = vsyncpa [#allocation3], 1 }
  0x3e   :  { %107 = vsyncpa [#allocation6], 1 }
  0x3f   :  { %108 = vsyncpa [#allocation4], 1 }

</bundles_post_ra>
